<compile_context>
chip_gen: v6e
topology: v6e:2x2x1
jax: 0.10.0
libtpu: 0.0.40
codegen_flags: <defaults>
</compile_context>

<pallas_src>
import math
import numpy as np
import jax
import jax.numpy as jnp
from jax.experimental import pallas as pl
from jax.experimental.pallas import tpu as pltpu

# ---------------- model hyper-parameters (small, consistent with the module) ----------------
VOCAB = 128
HIDDEN = 32            # language-model hidden size == ts encoder hidden size (merged directly)
NUM_LAYERS = 2
NUM_HEADS = 4
HEAD_DIM = HIDDEN // NUM_HEADS
HALF = HEAD_DIM // 2
INTER = 64
RMS_EPS = 1e-6
ROPE_THETA = 10000.0
KV_TILE = 8            # flash-attention KV row tile (sublane aligned)

TS_PATCH_SIZE = 16
TS_NUM_LAYERS = 3
TS_HIDDEN = HIDDEN
TS_NUM_FEATURES = 2    # (value, validity-mask)
TS_TOKEN_ID = 100      # config.ts_token_start_index

VMEM = pltpu.MemorySpace.VMEM


# ====================== Pallas kernels ======================

def ts_mlp(x_patches, weights, biases):
    """Fused TimeSeriesEmbedding MLP: (P, patch_size) -> (P, hidden) in one pallas_call."""
    # TODO(synk): tile over the patch dimension with a grid once P grows beyond a few hundred.
    nl = len(weights)

    def kernel(x_ref, *refs):
        o_ref = refs[-1]
        h = x_ref[...]
        for layer in range(nl):
            w = refs[2 * layer][...]                  # bf16 weight
            b = refs[2 * layer + 1][...]              # f32 bias
            h = jnp.dot(h.astype(jnp.bfloat16), w,
                        preferred_element_type=jnp.float32) + b
            if layer < nl - 1:
                # TODO(synk): nn.GELU() default is the exact (erf) form; tanh approximation
                # is used here for portable Mosaic lowering.
                h = jax.nn.gelu(h, approximate=True)
        o_ref[...] = h

    flat = []
    for w, b in zip(weights, biases):
        flat += [w, b.reshape(1, -1)]
    P = x_patches.shape[0]
    H = weights[-1].shape[1]
    return pl.pallas_call(
        kernel,
        out_shape=jax.ShapeDtypeStruct((P, H), jnp.float32),
        in_specs=[pl.BlockSpec(memory_space=VMEM) for _ in range(1 + len(flat))],
        out_specs=pl.BlockSpec(memory_space=VMEM),
    )(x_patches, *flat)


def _rms(x, w, eps=RMS_EPS):
    var = jnp.mean(x * x, axis=-1, keepdims=True)
    return x * jax.lax.rsqrt(var + eps) * w


def decoder_kernel(x_ref, cos_ref, sin_ref,
                   ln1_ref, qkvw_ref, qkvb_ref, ow_ref,
                   ln2_ref, gw_ref, uw_ref, dw_ref, fln_ref,
                   o_ref, h_ref):
    """One grid step == one Qwen2 decoder layer; hidden state lives in VMEM scratch h_ref."""
    layer = pl.program_id(0)

    @pl.when(layer == 0)
    def _():
        h_ref[...] = x_ref[...]

    h = h_ref[...]
    S = h.shape[0]

    # ---- self-attention block (fused: norm, qkv, rope, flash attention, o-proj, residual) ----
    hn = _rms(h, ln1_ref[0])                          # f32 VPU math
    qkv = jnp.dot(hn.astype(jnp.bfloat16), qkvw_ref[0],
                  preferred_element_type=jnp.float32) + qkvb_ref[0]
    q = qkv[:, :HIDDEN]
    k = qkv[:, HIDDEN:2 * HIDDEN]
    v = qkv[:, 2 * HIDDEN:]

    cos = cos_ref[...]                                # (S, HEAD_DIM//2) f32
    sin = sin_ref[...]
    scale = 1.0 / math.sqrt(HEAD_DIM)
    ow = ow_ref[0]                                    # (HIDDEN, HIDDEN) bf16

    # causal mask generated in-kernel per KV tile (no (S,S) HBM array)
    row_ids = jax.lax.broadcasted_iota(jnp.int32, (S, KV_TILE), 0)
    n_kv = S // KV_TILE
    dn = (((1,), (1,)), ((), ()))                     # contract feature dim of q with k

    attn_out = jnp.zeros((S, HIDDEN), jnp.float32)
    # TODO(synk): at production head_dim=128 the per-head lane slices are vreg aligned and
    # the two half-contractions should be fused into one 128-deep MXU contraction.
    for hh in range(NUM_HEADS):                       # static loop, lane-contiguous head slices
        lo = hh * HEAD_DIM
        q1, q2 = q[:, lo:lo + HALF], q[:, lo + HALF:lo + HEAD_DIM]
        k1, k2 = k[:, lo:lo + HALF], k[:, lo + HALF:lo + HEAD_DIM]
        vh = v[:, lo:lo + HEAD_DIM]

        # NeoX RoPE in half-split form: rotate_half never materialized, no rotation matrix.
        qa = q1 * cos - q2 * sin
        qb = q2 * cos + q1 * sin
        ka = k1 * cos - k2 * sin
        kb = k2 * cos + k1 * sin

        # flash-style online softmax over KV row tiles (scores never materialized at (S,S))
        m_i = jnp.full((S, 1), -1e30, jnp.float32)
        l_i = jnp.zeros((S, 1), jnp.float32)
        acc = jnp.zeros((S, HEAD_DIM), jnp.float32)
        for t in range(n_kv):
            sl = slice(t * KV_TILE, (t + 1) * KV_TILE)
            s = (jax.lax.dot_general(qa, ka[sl], dn, preferred_element_type=jnp.float32) +
                 jax.lax.dot_general(qb, kb[sl], dn, preferred_element_type=jnp.float32)) * scale
            col_ids = t * KV_TILE + jax.lax.broadcasted_iota(jnp.int32, (S, KV_TILE), 1)
            s = jnp.where(col_ids <= row_ids, s, -1e30)      # f32 mask math (bf16-safe design)
            m_new = jnp.maximum(m_i, jnp.max(s, axis=-1, keepdims=True))
            alpha = jnp.exp(m_i - m_new)
            p = jnp.exp(s - m_new)
            l_i = alpha * l_i + jnp.sum(p, axis=-1, keepdims=True)
            acc = alpha * acc + jnp.dot(p, vh[sl], preferred_element_type=jnp.float32)
            m_i = m_new
        head_out = acc * pl.reciprocal(l_i, approx=True)
        # per-head partial o_proj (bf16 weight rows) — no lane concatenation of head outputs
        attn_out = attn_out + jnp.dot(head_out.astype(jnp.bfloat16),
                                      ow[lo:lo + HEAD_DIM, :],
                                      preferred_element_type=jnp.float32)
    h = h + attn_out                                  # fused residual

    # ---- MLP block (fused SwiGLU + residual, bf16 weights / f32 activation math) ----
    hn = _rms(h, ln2_ref[0])
    hn_b = hn.astype(jnp.bfloat16)
    g = jnp.dot(hn_b, gw_ref[0], preferred_element_type=jnp.float32)
    u = jnp.dot(hn_b, uw_ref[0], preferred_element_type=jnp.float32)
    act = (g * jax.nn.sigmoid(g)) * u                 # SiLU in f32 (v5e has no bf16 VPU/EUP)
    h = h + jnp.dot(act.astype(jnp.bfloat16), dw_ref[0], preferred_element_type=jnp.float32)

    h_ref[...] = h

    @pl.when(layer == pl.num_programs(0) - 1)
    def _():
        o_ref[...] = _rms(h, fln_ref[...])            # final RMSNorm fused into last layer


def qwen2_decoder(params, x, positions):
    """Whole Qwen2 decoder stack (+ final norm) as one pallas_call with a grid over layers."""
    S = x.shape[0]
    assert S % KV_TILE == 0
    L = NUM_LAYERS

    cos, sin = rope_cos_sin(positions)                # (S, HEAD_DIM//2) — no head tiling in HBM

    cmap = lambda l: (0, 0)        # constants / resident blocks
    wmap = lambda l: (l, 0, 0)     # per-layer stacked weights

    # TODO(synk): toy lane width 32 (< 128) means masked stores; production hidden=3584 is
    # 28x128 lane-dense and resolves this.
    in_specs = [
        pl.BlockSpec((S, HIDDEN), cmap),                   # merged input embeddings (f32)
        pl.BlockSpec((S, HALF), cmap),                     # cos (S, head_dim/2)
        pl.BlockSpec((S, HALF), cmap),                     # sin
        pl.BlockSpec((1, 1, HIDDEN), wmap),                # input_layernorm (f32)
        pl.BlockSpec((1, HIDDEN, 3 * HIDDEN), wmap),       # qkv weight (bf16)
        pl.BlockSpec((1, 1, 3 * HIDDEN), wmap),            # qkv bias (f32)
        pl.BlockSpec((1, HIDDEN, HIDDEN), wmap),           # o_proj (bf16)
        pl.BlockSpec((1, 1, HIDDEN), wmap),                # post_attention_layernorm (f32)
        pl.BlockSpec((1, HIDDEN, INTER), wmap),            # gate_proj (bf16)
        pl.BlockSpec((1, HIDDEN, INTER), wmap),            # up_proj (bf16)
        pl.BlockSpec((1, INTER, HIDDEN), wmap),            # down_proj (bf16)
        pl.BlockSpec((1, HIDDEN), cmap),                   # final norm weight (f32)
    ]

    return pl.pallas_call(
        decoder_kernel,
        out_shape=jax.ShapeDtypeStruct((S, HIDDEN), jnp.float32),
        grid=(L,),
        in_specs=in_specs,
        out_specs=pl.BlockSpec((S, HIDDEN), cmap),
        scratch_shapes=[pltpu.VMEM((S, HIDDEN), jnp.float32)],
        compiler_params=pltpu.CompilerParams(dimension_semantics=("arbitrary",)),
    )(x, cos, sin,
      params['ln1'], params['qkv_w'], params['qkv_b'], params['o_w'],
      params['ln2'], params['gate_w'], params['up_w'], params['down_w'],
      params['final_ln'])


# ====================== parameters ======================

def init_params(key):
    keys = jax.random.split(key, 32)
    kit = iter(keys)

    def norm(shape, scale=0.02, dtype=jnp.float32):
        return (scale * jax.random.normal(next(kit), shape, dtype=jnp.float32)).astype(dtype)

    params = {}
    # TimeSeriesEmbedding MLP: (num_layers-1) x [Linear + GELU], then final Linear.
    # Matmul weights stored bf16 (MXU-native, halves DMA); biases stay f32.
    ts_w, ts_b = [], []
    in_size = 1 * TS_PATCH_SIZE
    for _ in range(TS_NUM_LAYERS - 1):
        ts_w.append(norm((in_size, TS_HIDDEN), dtype=jnp.bfloat16))
        ts_b.append(norm((TS_HIDDEN,)))
        in_size = TS_HIDDEN
    ts_w.append(norm((in_size, TS_HIDDEN), dtype=jnp.bfloat16))
    ts_b.append(norm((TS_HIDDEN,)))
    params['ts_w'], params['ts_b'] = ts_w, ts_b

    params['embed_tokens'] = norm((VOCAB, HIDDEN))

    # Per-layer weights stacked along a leading layer axis so a single grid-over-layers
    # pallas_call can DMA-prefetch next-layer weights while computing the current layer.
    # All big matmul weights are bf16 in HBM (f32 accumulation in-kernel).
    L = NUM_LAYERS
    params['ln1'] = jnp.ones((L, 1, HIDDEN), jnp.float32)
    params['qkv_w'] = norm((L, HIDDEN, 3 * HIDDEN), dtype=jnp.bfloat16)
    params['qkv_b'] = norm((L, 1, 3 * HIDDEN))
    params['o_w'] = norm((L, HIDDEN, HIDDEN), dtype=jnp.bfloat16)
    params['ln2'] = jnp.ones((L, 1, HIDDEN), jnp.float32)
    params['gate_w'] = norm((L, HIDDEN, INTER), dtype=jnp.bfloat16)
    params['up_w'] = norm((L, HIDDEN, INTER), dtype=jnp.bfloat16)
    params['down_w'] = norm((L, INTER, HIDDEN), dtype=jnp.bfloat16)
    params['final_ln'] = jnp.ones((1, HIDDEN), jnp.float32)
    return params


# ====================== forward-pass glue (mirrors the torch module) ======================

def ts_encoder_forward(params, ts_np):
    """TimeSeriesEmbedding.forward: returns (concatenated patch features, patch_cnt)."""
    # _parse_and_validate_ts_input casts to fp16; the MLP accumulates in f32 here.
    x = np.asarray(ts_np, dtype=np.float32)
    B = x.shape[0]
    x = x.reshape(B, -1, TS_NUM_FEATURES)
    mask = x[:, :, -1]
    valid_lengths = mask.sum(axis=1).astype(np.int64)
    patch_cnt = (valid_lengths + TS_PATCH_SIZE - 1) // TS_PATCH_SIZE

    # TODO(synk): ragged per-item extraction uses data-dependent shapes (torch `.item()`
    # loop); done host-side in numpy, the dense MLP hot path runs in the Pallas kernel.
    patches_list = []
    for i in range(B):
        vl, pc = int(valid_lengths[i]), int(patch_cnt[i])
        if pc == 0:
            continue
        xi = x[i, :vl, :1]
        pad = pc * TS_PATCH_SIZE - vl
        if pad > 0:
            xi = np.concatenate([xi, np.zeros((pad, 1), dtype=xi.dtype)], axis=0)
        patches_list.append(xi.reshape(pc, TS_PATCH_SIZE))

    if patches_list:
        x_patches = jnp.asarray(np.concatenate(patches_list, axis=0), dtype=jnp.float32)
        feats = ts_mlp(x_patches, params['ts_w'], params['ts_b'])
    else:
        feats = jnp.zeros((0, TS_HIDDEN), jnp.float32)
    return feats, patch_cnt


def rope_cos_sin(positions):
    """Half-size RoPE tables (S, head_dim/2); HF Qwen2 uses cat(freqs, freqs) so the two
    halves of cos/sin are identical — only one copy is shipped to the kernel."""
    inv_freq = 1.0 / (ROPE_THETA ** (jnp.arange(0, HEAD_DIM, 2, dtype=jnp.float32) / HEAD_DIM))
    ang = positions.astype(jnp.float32)[:, None] * inv_freq[None, :]   # (S, head_dim/2)
    return jnp.cos(ang), jnp.sin(ang)


def forward(params, input_ids, positions, timeseries):
    """Qwen2TSForCausalLM.forward -> hidden states (seq, hidden)."""
    # get_multimodal_embeddings (split-by-item then re-concat is a no-op for the merge).
    ts_features, patch_cnt = ts_encoder_forward(params, timeseries)

    # get_input_embeddings: token gather + placeholder merge (plain XLA select — cheaper
    # than a dedicated pallas_call at this size, fuses with the gather).
    text_embeds = jnp.take(params['embed_tokens'], input_ids, axis=0)
    is_ts = (input_ids == TS_TOKEN_ID)
    if ts_features.shape[0] > 0:
        gather_idx = jnp.clip(jnp.cumsum(is_ts.astype(jnp.int32)) - 1,
                              0, ts_features.shape[0] - 1)
        mm_rows = jnp.take(ts_features, gather_idx, axis=0)
        inputs_embeds = jnp.where(is_ts[:, None], mm_rows, text_embeds)
    else:
        inputs_embeds = text_embeds

    # language_model.model (Qwen2 decoder stack + final norm) — one fused pallas_call.
    return qwen2_decoder(params, inputs_embeds, positions)


# ====================== demo ======================

if __name__ == "__main__":
    root = jax.random.PRNGKey(0)
    pkey, vkey, ikey = jax.random.split(root, 3)
    params = init_params(pkey)

    # Time-series input: (num_series, padded_len, num_features) with a validity mask.
    B, T = 2, 48
    vals = np.array(jax.random.normal(vkey, (B, T), dtype=jnp.float32))
    valid_lengths = np.array([40, 24])                         # -> 3 + 2 = 5 patches
    mask = np.zeros((B, T), np.float32)
    for i, vl in enumerate(valid_lengths):
        mask[i, :vl] = 1.0
    timeseries = np.stack([vals, mask], axis=-1).astype(np.float16)

    total_patches = int(np.sum((valid_lengths + TS_PATCH_SIZE - 1) // TS_PATCH_SIZE))

    # Flattened vLLM-style token sequence with exactly `total_patches` <ts> placeholders.
    SEQ = 16
    ids = np.array(jax.random.randint(ikey, (SEQ,), 0, TS_TOKEN_ID), dtype=np.int32)
    placeholder_positions = [2, 3, 4, 9, 10][:total_patches]
    ids[placeholder_positions] = TS_TOKEN_ID
    input_ids = jnp.asarray(ids, dtype=jnp.int32)
    positions = jnp.arange(SEQ, dtype=jnp.int32)

    hidden_states = forward(params, input_ids, positions, timeseries)
    hidden_states = jax.block_until_ready(hidden_states)
    assert hidden_states.shape == (SEQ, HIDDEN)
    assert bool(jnp.all(jnp.isfinite(hidden_states)))
    print("KERNEL_OK")
</pallas_src>

<mosaic_0001>
module attributes {stable_mosaic.version = 11 : i64} {
  func.func @kernel(%arg0: memref<5x16xf32, #tpu.memory_space<vmem>>, %arg1: memref<16x32xbf16, #tpu.memory_space<vmem>>, %arg2: memref<1x32xf32, #tpu.memory_space<vmem>>, %arg3: memref<32x32xbf16, #tpu.memory_space<vmem>>, %arg4: memref<1x32xf32, #tpu.memory_space<vmem>>, %arg5: memref<32x32xbf16, #tpu.memory_space<vmem>>, %arg6: memref<1x32xf32, #tpu.memory_space<vmem>>, %arg7: memref<5x32xf32, #tpu.memory_space<vmem>>) attributes {dimension_semantics = [], scalar_prefetch = 0 : i64, scratch_operands = 0 : i64, tpu.core_type = #tpu.core_type<tc>} {
    %c0 = arith.constant 0 : index
    %c0_0 = arith.constant 0 : index
    %0 = vector.load %arg0[%c0, %c0_0] : memref<5x16xf32, #tpu.memory_space<vmem>>, vector<5x16xf32>
    %c0_1 = arith.constant 0 : index
    %c0_2 = arith.constant 0 : index
    %1 = vector.load %arg1[%c0_1, %c0_2] : memref<16x32xbf16, #tpu.memory_space<vmem>>, vector<16x32xbf16>
    %c0_3 = arith.constant 0 : index
    %c0_4 = arith.constant 0 : index
    %2 = vector.load %arg2[%c0_3, %c0_4] : memref<1x32xf32, #tpu.memory_space<vmem>>, vector<1x32xf32>
    %3 = arith.truncf %0 : vector<5x16xf32> to vector<5x16xbf16>
    %cst = arith.constant dense<0.000000e+00> : vector<5x32xf32>
    %4 = tpu.matmul %3, %1, %cst {dimension_numbers = #tpu.dot_dimension_numbers<[1], [0], [0], [1], [0, 0, 1, 1], [], []>} : vector<5x16xbf16>, vector<16x32xbf16>, vector<5x32xf32> -> vector<5x32xf32>
    %5 = vector.broadcast %2 : vector<1x32xf32> to vector<5x32xf32>
    %6 = arith.addf %4, %5 : vector<5x32xf32>
    %7 = arith.mulf %6, %6 : vector<5x32xf32>
    %8 = arith.mulf %6, %7 : vector<5x32xf32>
    %cst_5 = arith.constant 4.471500e-02 : f32
    %9 = vector.broadcast %cst_5 : f32 to vector<5x32xf32>
    %10 = arith.mulf %9, %8 : vector<5x32xf32>
    %11 = arith.addf %6, %10 : vector<5x32xf32>
    %cst_6 = arith.constant 0.797884583 : f32
    %12 = vector.broadcast %cst_6 : f32 to vector<5x32xf32>
    %13 = arith.mulf %12, %11 : vector<5x32xf32>
    %14 = math.tanh %13 : vector<5x32xf32>
    %cst_7 = arith.constant 1.000000e+00 : f32
    %15 = vector.broadcast %cst_7 : f32 to vector<5x32xf32>
    %16 = arith.addf %15, %14 : vector<5x32xf32>
    %cst_8 = arith.constant 5.000000e-01 : f32
    %17 = vector.broadcast %cst_8 : f32 to vector<5x32xf32>
    %18 = arith.mulf %17, %16 : vector<5x32xf32>
    %19 = arith.mulf %6, %18 : vector<5x32xf32>
    %c0_9 = arith.constant 0 : index
    %c0_10 = arith.constant 0 : index
    %20 = vector.load %arg3[%c0_9, %c0_10] : memref<32x32xbf16, #tpu.memory_space<vmem>>, vector<32x32xbf16>
    %c0_11 = arith.constant 0 : index
    %c0_12 = arith.constant 0 : index
    %21 = vector.load %arg4[%c0_11, %c0_12] : memref<1x32xf32, #tpu.memory_space<vmem>>, vector<1x32xf32>
    %22 = arith.truncf %19 : vector<5x32xf32> to vector<5x32xbf16>
    %cst_13 = arith.constant dense<0.000000e+00> : vector<5x32xf32>
    %23 = tpu.matmul %22, %20, %cst_13 {dimension_numbers = #tpu.dot_dimension_numbers<[1], [0], [0], [1], [0, 0, 1, 1], [], []>} : vector<5x32xbf16>, vector<32x32xbf16>, vector<5x32xf32> -> vector<5x32xf32>
    %24 = vector.broadcast %21 : vector<1x32xf32> to vector<5x32xf32>
    %25 = arith.addf %23, %24 : vector<5x32xf32>
    %26 = arith.mulf %25, %25 : vector<5x32xf32>
    %27 = arith.mulf %25, %26 : vector<5x32xf32>
    %cst_14 = arith.constant 4.471500e-02 : f32
    %28 = vector.broadcast %cst_14 : f32 to vector<5x32xf32>
    %29 = arith.mulf %28, %27 : vector<5x32xf32>
    %30 = arith.addf %25, %29 : vector<5x32xf32>
    %cst_15 = arith.constant 0.797884583 : f32
    %31 = vector.broadcast %cst_15 : f32 to vector<5x32xf32>
    %32 = arith.mulf %31, %30 : vector<5x32xf32>
    %33 = math.tanh %32 : vector<5x32xf32>
    %cst_16 = arith.constant 1.000000e+00 : f32
    %34 = vector.broadcast %cst_16 : f32 to vector<5x32xf32>
    %35 = arith.addf %34, %33 : vector<5x32xf32>
    %cst_17 = arith.constant 5.000000e-01 : f32
    %36 = vector.broadcast %cst_17 : f32 to vector<5x32xf32>
    %37 = arith.mulf %36, %35 : vector<5x32xf32>
    %38 = arith.mulf %25, %37 : vector<5x32xf32>
    %c0_18 = arith.constant 0 : index
    %c0_19 = arith.constant 0 : index
    %39 = vector.load %arg5[%c0_18, %c0_19] : memref<32x32xbf16, #tpu.memory_space<vmem>>, vector<32x32xbf16>
    %c0_20 = arith.constant 0 : index
    %c0_21 = arith.constant 0 : index
    %40 = vector.load %arg6[%c0_20, %c0_21] : memref<1x32xf32, #tpu.memory_space<vmem>>, vector<1x32xf32>
    %41 = arith.truncf %38 : vector<5x32xf32> to vector<5x32xbf16>
    %cst_22 = arith.constant dense<0.000000e+00> : vector<5x32xf32>
    %42 = tpu.matmul %41, %39, %cst_22 {dimension_numbers = #tpu.dot_dimension_numbers<[1], [0], [0], [1], [0, 0, 1, 1], [], []>} : vector<5x32xbf16>, vector<32x32xbf16>, vector<5x32xf32> -> vector<5x32xf32>
    %43 = vector.broadcast %40 : vector<1x32xf32> to vector<5x32xf32>
    %44 = arith.addf %42, %43 : vector<5x32xf32>
    %c0_23 = arith.constant 0 : index
    %c0_24 = arith.constant 0 : index
    %45 = vector.load %arg7[%c0_23, %c0_24] : memref<5x32xf32, #tpu.memory_space<vmem>>, vector<5x32xf32>
    tpu.vector_store %arg7[%c0_23, %c0_24], %44 {strides = array<i32>} : memref<5x32xf32, #tpu.memory_space<vmem>>, vector<5x32xf32>,
    return
  }
}

</mosaic_0001>

<bundles_post_ra>
// kernel: tpu_custom_call.1
= control target key start
LH: loop header
LB: loop body
LE: loop exit
PB: predicated region body
PF: predicated region fallthrough
CT: control target
= control target key end

     0   :  { %12 = vsyncpa [#allocation3], 0  ;;  %s565_s0 = inlined_call_operand.hbm [shape: f32[5,16], index: 0, kind: input, shape index: {}]   ;;  %s566_s1 = inlined_call_operand.hbm [shape: bf16[16,32], index: 1, kind: input, shape index: {}]   ;;  %s567_s2 = inlined_call_operand.vmem [shape: f32[1,32], index: 2, kind: input, shape index: {}]   ;;  %s568_s3 = inlined_call_operand.hbm [shape: bf16[32,32], index: 3, kind: input, shape index: {}]   ;;  %s569_s4 = inlined_call_operand.vmem [shape: f32[1,32], index: 4, kind: input, shape index: {}]   ;;  %s570_s5 = inlined_call_operand.hbm [shape: bf16[32,32], index: 5, kind: input, shape index: {}]   ;;  %s571_s6 = inlined_call_operand.vmem [shape: f32[1,32], index: 6, kind: input, shape index: {}]   ;;  %s572_s7 = inlined_call_operand.hbm [shape: f32[5,32], index: 7, kind: output, shape index: {}]  }
   0x1   :  { %13 = vsyncpa [#allocation6], 0 }
   0x2   :  { %14 = vsyncpa [#allocation9], 0 }
   0x3   :  { %15 = vsyncpa [#allocation4], 0  ;;  %s481_s24 = smov [#allocation5]  }
   0x4   :  { %s31_s25 = sshll.u32 %s481_s24, 4  ;;  %s32_s25 = int_to_ptr.vmem [resolvable:$true] %s31_s25 }
   0x5   :  { %s381_s26 = scalar_lea.vmem %s32_s25, 128  ;;  %p386_p1 = scmp.lt.s32.totalorder %s32_s25, %s32_s25 }
   0x6   :  { %p382_p0 = scmp.ne.s32.totalorder %s32_s25, %s381_s26  ;;  %p387_p2 = scmp.lt.s32.totalorder %s381_s26, %s381_s26 }
   0x8   :  { %p388_p3 = por %p387_p2, %p386_p1 }
   0xa   :  { %p389_p4 = pnand %p388_p3, %p382_p0 }
   0xc   :  { %392 = shalt.err (!%p389_p4)
}
   0xd   :  { %s482_s27 = smov 64   ;;  %s483_s28 = smov 4  }
   0xe   :  { %37 = dma.hbm_to_vmem [thread:$0]  %s566_s1, 128, %s32_s25, [#allocation6], %s482_s27, %s482_s27, %s483_s28  }
   0xf   :  { %s484_s8 = smov [#allocation2]   ;;  %s485_s10 = smov [#allocation7]  }
  0x10   :  { %s22_s9 = sshll.u32 %s484_s8, 4  ;;  %s45_s11 = sshll.u32 %s485_s10, 4  ;;  %s23_s9 = int_to_ptr.vmem [resolvable:$true] %s22_s9  ;;  %s46_s11 = int_to_ptr.vmem [resolvable:$true] %s45_s11 }
  0x11   :  { %s401_s12 = scalar_lea.vmem %s23_s9, 128  ;;  %p406_p6 = scmp.lt.s32.totalorder %s23_s9, %s23_s9 }
  0x12   :  { %p402_p5 = scmp.ne.s32.totalorder %s23_s9, %s401_s12  ;;  %p407_p7 = scmp.lt.s32.totalorder %s401_s12, %s401_s12 }
  0x14   :  { %p408_p8 = por %p407_p7, %p406_p6 }
  0x16   :  { %p409_p9 = pnand %p408_p8, %p402_p5 }
  0x18   :  { %412 = shalt.err (!%p409_p9)
}
  0x19   :  { %25 = dma.hbm_to_vmem [thread:$0]  %s565_s0, 128, %s23_s9, [#allocation3]  }
  0x1a   :  { %s421_s15 = scalar_lea.vmem %s46_s11, 256  ;;  %p426_p11 = scmp.lt.s32.totalorder %s46_s11, %s46_s11 }
  0x1b   :  { %p422_p10 = scmp.ne.s32.totalorder %s46_s11, %s421_s15  ;;  %p427_p12 = scmp.lt.s32.totalorder %s421_s15, %s421_s15 }
  0x1d   :  { %p428_p13 = por %p427_p12, %p426_p11 }
  0x1f   :  { %p429_p0 = pnand %p428_p13, %p422_p10 }
  0x21   :  { %432 = shalt.err (!%p429_p0)
}
  0x22   :  { %51 = dma.hbm_to_vmem [thread:$0]  %s568_s3, 256, %s46_s11, [#allocation6], %s482_s27, %s482_s27, %s483_s28  }
  0x23   :  { %s486_s17 = smov [#allocation8]  }
  0x24   :  { %s59_s18 = sshll.u32 %s486_s17, 4  ;;  %s60_s18 = int_to_ptr.vmem [resolvable:$true] %s59_s18 }
  0x25   :  { %s441_s19 = scalar_lea.vmem %s60_s18, 256  ;;  %p446_p2 = scmp.lt.s32.totalorder %s60_s18, %s60_s18 }
  0x26   :  { %p442_p1 = scmp.ne.s32.totalorder %s60_s18, %s441_s19  ;;  %p447_p3 = scmp.lt.s32.totalorder %s441_s19, %s441_s19 }
  0x28   :  { %p448_p4 = por %p447_p3, %p446_p2 }
  0x2a   :  { %p449_p5 = pnand %p448_p4, %p442_p1 }
  0x2c   :  { %452 = shalt.err (!%p449_p5)
}
  0x2d   :  { %65 = dma.hbm_to_vmem [thread:$0]  %s570_s5, 256, %s60_s18, [#allocation9], %s482_s27, %s482_s27, %s483_s28  }
  0x2e   :  { %473 = dma.done.wait [#allocation3], 128  }
  0x2f   :  { %474 = vsyncadd [#allocation3], 4294967168 }
  0x30   :  { %475 = dma.done.wait [#allocation6], 384  }
  0x31   :  { %476 = vsyncadd [#allocation6], 4294966912 }
  0x32   :  { %477 = dma.done.wait [#allocation9], 256  }
  0x33   :  { %478 = vsyncadd [#allocation9], 4294967040  ;;  %v487_v0 = vmov 0.0   ;;  %vm488_vm0 = vmmov 0   ;;  %v364_v1 = vld [vmem:[#allocation5] sm:$0xff]   ;;  %vm98_vm1 = vcmask 130048  }
  0x34   :  { %333 = vmatprep.subr.bf16.mxu0 %v487_v0  ;;  %335 = vmatprep.mubr.msk.bf16.mxu0 %vm488_vm0, %v487_v0  ;;  %v81_v2 = vld [vmem:[#allocation2] sm:$0x1f]  ;;  %v365_v4 = vld [vmem:[#allocation7 + $0x8] sm:$0xff]   ;;  %v366_v5 = vld [vmem:[#allocation7] sm:$0xff]   ;;  %vm175_vm2 = vcmask 261120   ;;  %s489_s23 = smov [#allocation10]  }
  0x35   :  { %339 = vmatprep.subr.bf16.mxu1 %v487_v0  ;;  %343 = vmatprep.mubr.msk.bf16.mxu1 %vm488_vm0, %v487_v0  ;;  %v85_v3 = vpack.c.bf16 %v81_v2, %v81_v2  ;;  %v314_v6 = vld [vmem:[%s567_s2] ss:$0 sm:$0xff]  ;;  %v367_v22 = vld [vmem:[#allocation8 + $0x8] sm:$0xff]   ;;  %s303_s24 = sshll.u32 %s489_s23, 4  ;;  %vm295_vm3 = vcmask 258048   ;;  %s304_s24 = int_to_ptr.vmem [resolvable:$true] %s303_s24 }
  0x36   :  { %334 = vmatpush3.bf16.msra.mxu0 %v364_v1  ;;  %340 = vmatpush3.bf16.msra.mxu1 %v365_v4  ;;  %v368_v23 = vld [vmem:[#allocation8] sm:$0xff]   ;;  %s453_s25 = scalar_lea.vmem %s304_s24, 128  ;;  %p458_p7 = scmp.lt.s32.totalorder %s304_s24, %s304_s24 }
  0x37   :  { %347 = vmatprep.subr.bf16.mxu0 %v487_v0  ;;  %341 = vmatprep.subr.bf16.mxu1 %v487_v0  ;;  %v317_v24 = vld [vmem:[%s569_s4] ss:$0 sm:$0xff]  ;;  %p454_p6 = scmp.ne.s32.totalorder %s304_s24, %s453_s25  ;;  %p459_p8 = scmp.lt.s32.totalorder %s453_s25, %s453_s25 }
  0x38   :  { %v321_v40 = vld [vmem:[%s571_s6] ss:$0 sm:$0xff] }
  0x39   :  { %336 = vmatmul.mubr.msk.bf16.vlgmr.msra.gmra.mxu0 %vm98_vm1, %v85_v3  ;;  %p460_p9 = por %p459_p8, %p458_p7 }
  0x3a   :  { %351 = vmatprep.mubr.msk.bf16.mxu0 %vm488_vm0, %v487_v0  ;;  %342 = vmatpush3.bf16.msra.mxu1 %v366_v5 }
  0x3b   :  { %348 = vmatpush3.bf16.msra.mxu0 %v367_v22  ;;  %p461_p10 = pnand %p460_p9, %p454_p6 }
  0x3c   :  { %349 = vmatprep.subr.bf16.mxu0 %v487_v0 }
  0x3f   :  { %350 = vmatpush3.bf16.msra.mxu0 %v368_v23 }
  0xf9   :  { %v136_v7 = vpop.f32.mrf.mxu0 }
  0xfa   :  { %v137_v8 = vadd.f32 %v314_v6, %v136_v7 }
  0xfb   :  { %v337_v9 = vpop.f32.mrf.mxu0 }
  0xfc   :  { %v142_v10 = vmul.f32 %v137_v8, %v137_v8 }
  0xfd   :  { %v139_v11 = vpop.f32.mrf.mxu0 }
  0xfe   :  { %v143_v12 = vmul.f32 %v142_v10, %v137_v8 }
  0xff   :  { %v338_v13 = vpop.f32.mrf.mxu0 }
 0x100   :  { %v144_v14 = vmul.f32 0.044715, %v143_v12 }
 0x102   :  { %v145_v15 = vadd.f32 %v144_v14, %v137_v8 }
 0x104   :  { %v146_v16 = vmul.f32 0.7978846, %v145_v15 }
 0x106   :  { %369 = vtanh.f32 %v146_v16 }
 0x113   :  { %v370_v17 = vpop.eup %369 }
 0x114   :  { %v148_v18 = vadd.f32 1.0, %v370_v17 }
 0x116   :  { %v149_v19 = vmul.f32 0.5, %v148_v18 }
 0x118   :  { %v150_v20 = vmul.f32 %v149_v19, %v137_v8 }
 0x11a   :  { %v156_v21 = vpack.c.bf16 %v150_v20, %v150_v20 }
 0x11c   :  { %344 = vmatmul.mubr.msk.bf16.vlgmr.msra.gmra.mxu1 %vm175_vm2, %v156_v21 }
 0x1dc   :  { %v213_v25 = vpop.f32.mrf.mxu1 }
 0x1dd   :  { %v214_v26 = vadd.f32 %v317_v24, %v213_v25 }
 0x1de   :  { %v345_v27 = vpop.f32.mrf.mxu1 }
 0x1df   :  { %v219_v28 = vmul.f32 %v214_v26, %v214_v26 }
 0x1e0   :  { %v216_v29 = vpop.f32.mrf.mxu1 }
 0x1e1   :  { %v220_v30 = vmul.f32 %v219_v28, %v214_v26 }
 0x1e2   :  { %v346_v31 = vpop.f32.mrf.mxu1 }
 0x1e3   :  { %v221_v32 = vmul.f32 0.044715, %v220_v30 }
 0x1e5   :  { %v222_v33 = vadd.f32 %v221_v32, %v214_v26 }
 0x1e7   :  { %v223_v34 = vmul.f32 0.7978846, %v222_v33 }
 0x1e9   :  { %371 = vtanh.f32 %v223_v34 }
 0x1f6   :  { %v372_v35 = vpop.eup %371 }
 0x1f7   :  { %v225_v36 = vadd.f32 1.0, %v372_v35 }
 0x1f9   :  { %v226_v37 = vmul.f32 0.5, %v225_v36 }
 0x1fb   :  { %v227_v38 = vmul.f32 %v226_v37, %v214_v26 }
 0x1fd   :  { %v233_v39 = vpack.c.bf16 %v227_v38, %v227_v38 }
 0x1ff   :  { %352 = vmatmul.mubr.msk.bf16.vlgmr.msra.gmra.mxu0 %vm175_vm2, %v233_v39 }
 0x2bf   :  { %v289_v41 = vpop.f32.mrf.mxu0 }
 0x2c0   :  { %v290_v42 = vadd.f32 %v321_v40, %v289_v41 }
 0x2c1   :  { %v353_v43 = vpop.f32.mrf.mxu0 }
 0x2c2   :  { %296 = vst.msk [vmem:[#allocation10] sm:$0x1f] %vm295_vm3, %v290_v42 }
 0x2c3   :  { %v292_v44 = vpop.f32.mrf.mxu0 }
 0x2c4   :  { %464 = shalt.err (!%p461_p10)
}
 0x2c5   :  { %306 = dma.vmem_to_hbm [thread:$0]  %s304_s24, 128, %s572_s7, [#allocation4]   ;;  %v354_v45 = vpop.f32.mrf.mxu0 }
 0x2c6   :  { %479 = dma.done.wait [#allocation4], 128  }
 0x2c7   :  { %480 = vsyncadd [#allocation4], 4294967168 }
 0x2c8   :  { %310 = vsyncpa [#allocation3], 1 }
 0x2c9   :  { %311 = vsyncpa [#allocation6], 1 }
 0x2ca   :  { %312 = vsyncpa [#allocation9], 1 }
 0x2cb   :  { %313 = vsyncpa [#allocation4], 1 }

</bundles_post_ra>
